<compile_context>
chip_gen: v5e
topology: v5e:2x2
jax: 0.10.0
libtpu: 0.0.40
codegen_flags: <defaults>
</compile_context>

<pallas_src>
import jax
import jax.numpy as jnp
from jax.experimental import pallas as pl
from jax.experimental.pallas import tpu as pltpu


def features_linear_kernel(xt_ref, wt_ref, b_ref, ot_ref):
    # xt_ref: (F, TB) int32   -- indices, batch on the lane axis
    # wt_ref: (D, V)  f32     -- transposed embedding table (VMEM-resident)
    # b_ref : (D, 1)  f32     -- bias (VMEM-resident)
    # ot_ref: (D, TB) f32     -- transposed output tile
    F, TB = xt_ref.shape
    D, V = wt_ref.shape

    idx = xt_ref[...]                                           # (F, TB) int32
    iota_v = jax.lax.broadcasted_iota(jnp.int32, (V, TB), 0)    # (V, TB)

    # counts[v, b] = #{ f : x[b, f] == v }.  Built field-by-field so no
    # (F, V, TB) intermediate is ever materialized; F is small & static so the
    # Python loop is fully unrolled at trace time (lane-dense compares over
    # the batch axis).  Accumulate in int32, cast once at the end.
    counts = jnp.zeros((V, TB), dtype=jnp.int32)
    for f in range(F):
        counts = counts + (iota_v == idx[f, :][None, :]).astype(jnp.int32)
    counts_f = counts.astype(jnp.float32)

    # sum_f emb[x[b, f], :]  ==  emb^T @ counts   (single MXU matmul per tile)
    out = jnp.dot(wt_ref[...], counts_f, preferred_element_type=jnp.float32)
    ot_ref[...] = out + b_ref[...]              # bias folded into the epilogue


def features_linear(x, weight, bias, *, batch_tile=256):
    """x: (B, F) int, weight: (V, D) f32, bias: (D,) f32 -> (B, D) f32."""
    B, F = x.shape
    V, D = weight.shape
    tb = batch_tile
    bp = pl.cdiv(B, tb) * tb                    # pad batch to a tile multiple

    # Layout plumbing (outside the kernel): batch on the lane axis,
    # table transposed to (D, V), bias as a (D, 1) column.
    x_t = jnp.pad(x.astype(jnp.int32), ((0, bp - B), (0, 0))).T   # (F, BP)
    w_t = weight.astype(jnp.float32).T                            # (D, V)
    b_2d = bias.astype(jnp.float32).reshape(D, 1)                 # (D, 1)

    out_t = pl.pallas_call(
        features_linear_kernel,
        out_shape=jax.ShapeDtypeStruct((D, bp), jnp.float32),
        grid_spec=pltpu.PrefetchScalarGridSpec(
            num_scalar_prefetch=0,
            grid=(bp // tb,),
            in_specs=[
                pl.BlockSpec((F, tb), lambda i: (0, i)),   # per-tile indices
                pl.BlockSpec((D, V), lambda i: (0, 0)),    # resident table
                pl.BlockSpec((D, 1), lambda i: (0, 0)),    # resident bias
            ],
            out_specs=pl.BlockSpec((D, tb), lambda i: (0, i)),
        ),
        compiler_params=pltpu.CompilerParams(
            dimension_semantics=("parallel",)),
    )(x_t, w_t, b_2d)

    return out_t.T[:B]                                            # (B, D)


if __name__ == "__main__":
    key = jax.random.PRNGKey(0)
    k_idx, k_emb, k_bias = jax.random.split(key, 3)

    # Small shapes consistent with the module; batch chosen so the grid has
    # multiple tiles and the padding path (600 -> 768 at tb=256) is exercised.
    batch, num_fields, field_dims, output_dim = 600, 8, 32, 1

    x = jax.random.randint(k_idx, (batch, num_fields), 0, field_dims,
                           dtype=jnp.int32)
    # torch.nn.Embedding default init ~ N(0, 1); bias param (zeros at init,
    # arbitrary after training -- use a nonzero value to exercise the add).
    weight = jax.random.normal(k_emb, (field_dims, output_dim),
                               dtype=jnp.float32)
    bias = 0.1 * jax.random.normal(k_bias, (output_dim,), dtype=jnp.float32)

    out = jax.block_until_ready(features_linear(x, weight, bias))

    # Pure-JAX reference of the same semantics.
    ref = jnp.sum(weight[x], axis=1) + bias
    assert out.shape == (batch, output_dim)
    assert jnp.allclose(out, ref, atol=1e-5, rtol=1e-5)

    print("KERNEL_OK")
</pallas_src>

<mosaic_0001>
module attributes {stable_mosaic.version = 11 : i64} {
  func.func @features_linear_kernel(%arg0: i32, %arg1: memref<8x256xi32, #tpu.memory_space<vmem>>, %arg2: memref<1x32xf32, #tpu.memory_space<vmem>>, %arg3: memref<1x1xf32, #tpu.memory_space<vmem>>, %arg4: memref<1x256xf32, #tpu.memory_space<vmem>>) attributes {dimension_semantics = [#tpu.dimension_semantics<parallel>], iteration_bounds = array<i64: 3>, scalar_prefetch = 0 : i64, scratch_operands = 0 : i64, tpu.core_type = #tpu.core_type<tc>, window_params = [{transform_indices = @transform_0, window_bounds = array<i64: 8, 256>}, {pipeline_mode = #tpu.pipeline_mode<synchronous>, transform_indices = @transform_1, window_bounds = array<i64: 1, 32>}, {pipeline_mode = #tpu.pipeline_mode<synchronous>, transform_indices = @transform_2, window_bounds = array<i64: 1, 1>}, {transform_indices = @transform_3, window_bounds = array<i64: 1, 256>}]} {
    %c0 = arith.constant 0 : index
    %c0_0 = arith.constant 0 : index
    %0 = vector.load %arg1[%c0, %c0_0] : memref<8x256xi32, #tpu.memory_space<vmem>>, vector<8x256xi32>
    %1 = tpu.iota {dimensions = array<i32: 0>} : vector<32x256xi32>
    %c0_i32 = arith.constant 0 : i32
    %2 = vector.broadcast %c0_i32 : i32 to vector<32x256xi32>
    %3 = vector.extract_strided_slice %0 {offsets = [0, 0], sizes = [1, 256], strides = [1, 1]} : vector<8x256xi32> to vector<1x256xi32>
    %4 = vector.shape_cast %3 : vector<1x256xi32> to vector<256xi32>
    %5 = vector.shape_cast %4 : vector<256xi32> to vector<1x256xi32>
    %6 = vector.broadcast %5 : vector<1x256xi32> to vector<32x256xi32>
    %7 = arith.cmpi eq, %1, %6 : vector<32x256xi32>
    %8 = arith.extui %7 : vector<32x256xi1> to vector<32x256xi32>
    %9 = arith.addi %2, %8 : vector<32x256xi32>
    %10 = vector.extract_strided_slice %0 {offsets = [1, 0], sizes = [1, 256], strides = [1, 1]} : vector<8x256xi32> to vector<1x256xi32>
    %11 = vector.shape_cast %10 : vector<1x256xi32> to vector<256xi32>
    %12 = vector.shape_cast %11 : vector<256xi32> to vector<1x256xi32>
    %13 = vector.broadcast %12 : vector<1x256xi32> to vector<32x256xi32>
    %14 = arith.cmpi eq, %1, %13 : vector<32x256xi32>
    %15 = arith.extui %14 : vector<32x256xi1> to vector<32x256xi32>
    %16 = arith.addi %9, %15 : vector<32x256xi32>
    %17 = vector.extract_strided_slice %0 {offsets = [2, 0], sizes = [1, 256], strides = [1, 1]} : vector<8x256xi32> to vector<1x256xi32>
    %18 = vector.shape_cast %17 : vector<1x256xi32> to vector<256xi32>
    %19 = vector.shape_cast %18 : vector<256xi32> to vector<1x256xi32>
    %20 = vector.broadcast %19 : vector<1x256xi32> to vector<32x256xi32>
    %21 = arith.cmpi eq, %1, %20 : vector<32x256xi32>
    %22 = arith.extui %21 : vector<32x256xi1> to vector<32x256xi32>
    %23 = arith.addi %16, %22 : vector<32x256xi32>
    %24 = vector.extract_strided_slice %0 {offsets = [3, 0], sizes = [1, 256], strides = [1, 1]} : vector<8x256xi32> to vector<1x256xi32>
    %25 = vector.shape_cast %24 : vector<1x256xi32> to vector<256xi32>
    %26 = vector.shape_cast %25 : vector<256xi32> to vector<1x256xi32>
    %27 = vector.broadcast %26 : vector<1x256xi32> to vector<32x256xi32>
    %28 = arith.cmpi eq, %1, %27 : vector<32x256xi32>
    %29 = arith.extui %28 : vector<32x256xi1> to vector<32x256xi32>
    %30 = arith.addi %23, %29 : vector<32x256xi32>
    %31 = vector.extract_strided_slice %0 {offsets = [4, 0], sizes = [1, 256], strides = [1, 1]} : vector<8x256xi32> to vector<1x256xi32>
    %32 = vector.shape_cast %31 : vector<1x256xi32> to vector<256xi32>
    %33 = vector.shape_cast %32 : vector<256xi32> to vector<1x256xi32>
    %34 = vector.broadcast %33 : vector<1x256xi32> to vector<32x256xi32>
    %35 = arith.cmpi eq, %1, %34 : vector<32x256xi32>
    %36 = arith.extui %35 : vector<32x256xi1> to vector<32x256xi32>
    %37 = arith.addi %30, %36 : vector<32x256xi32>
    %38 = vector.extract_strided_slice %0 {offsets = [5, 0], sizes = [1, 256], strides = [1, 1]} : vector<8x256xi32> to vector<1x256xi32>
    %39 = vector.shape_cast %38 : vector<1x256xi32> to vector<256xi32>
    %40 = vector.shape_cast %39 : vector<256xi32> to vector<1x256xi32>
    %41 = vector.broadcast %40 : vector<1x256xi32> to vector<32x256xi32>
    %42 = arith.cmpi eq, %1, %41 : vector<32x256xi32>
    %43 = arith.extui %42 : vector<32x256xi1> to vector<32x256xi32>
    %44 = arith.addi %37, %43 : vector<32x256xi32>
    %45 = vector.extract_strided_slice %0 {offsets = [6, 0], sizes = [1, 256], strides = [1, 1]} : vector<8x256xi32> to vector<1x256xi32>
    %46 = vector.shape_cast %45 : vector<1x256xi32> to vector<256xi32>
    %47 = vector.shape_cast %46 : vector<256xi32> to vector<1x256xi32>
    %48 = vector.broadcast %47 : vector<1x256xi32> to vector<32x256xi32>
    %49 = arith.cmpi eq, %1, %48 : vector<32x256xi32>
    %50 = arith.extui %49 : vector<32x256xi1> to vector<32x256xi32>
    %51 = arith.addi %44, %50 : vector<32x256xi32>
    %52 = vector.extract_strided_slice %0 {offsets = [7, 0], sizes = [1, 256], strides = [1, 1]} : vector<8x256xi32> to vector<1x256xi32>
    %53 = vector.shape_cast %52 : vector<1x256xi32> to vector<256xi32>
    %54 = vector.shape_cast %53 : vector<256xi32> to vector<1x256xi32>
    %55 = vector.broadcast %54 : vector<1x256xi32> to vector<32x256xi32>
    %56 = arith.cmpi eq, %1, %55 : vector<32x256xi32>
    %57 = arith.extui %56 : vector<32x256xi1> to vector<32x256xi32>
    %58 = arith.addi %51, %57 : vector<32x256xi32>
    %59 = arith.sitofp %58 : vector<32x256xi32> to vector<32x256xf32>
    %c0_1 = arith.constant 0 : index
    %c0_2 = arith.constant 0 : index
    %60 = vector.load %arg2[%c0_1, %c0_2] : memref<1x32xf32, #tpu.memory_space<vmem>>, vector<1x32xf32>
    %cst = arith.constant dense<0.000000e+00> : vector<1x256xf32>
    %61 = tpu.matmul %60, %59, %cst {dimension_numbers = #tpu.dot_dimension_numbers<[1], [0], [0], [1], [0, 0, 1, 1], [], []>} : vector<1x32xf32>, vector<32x256xf32>, vector<1x256xf32> -> vector<1x256xf32>
    %c0_3 = arith.constant 0 : index
    %c0_4 = arith.constant 0 : index
    %62 = vector.load %arg3[%c0_3, %c0_4] : memref<1x1xf32, #tpu.memory_space<vmem>>, vector<1x1xf32>
    %63 = vector.broadcast %62 : vector<1x1xf32> to vector<1x256xf32>
    %64 = arith.addf %61, %63 : vector<1x256xf32>
    %c0_5 = arith.constant 0 : index
    %c0_6 = arith.constant 0 : index
    %65 = vector.load %arg4[%c0_5, %c0_6] : memref<1x256xf32, #tpu.memory_space<vmem>>, vector<1x256xf32>
    tpu.vector_store %arg4[%c0_5, %c0_6], %64 {strides = array<i32>} : memref<1x256xf32, #tpu.memory_space<vmem>>, vector<1x256xf32>,
    return
  }
  func.func @transform_0(%arg0: i32) -> (i32, i32) {
    %c0_i32 = arith.constant 0 : i32
    %c0_i32_0 = arith.constant 0 : i32
    return %c0_i32, %arg0 : i32, i32
  }
  func.func @transform_1(%arg0: i32) -> (i32, i32) {
    %c0_i32 = arith.constant 0 : i32
    %c0_i32_0 = arith.constant 0 : i32
    %c0_i32_1 = arith.constant 0 : i32
    return %c0_i32, %c0_i32_0 : i32, i32
  }
  func.func @transform_2(%arg0: i32) -> (i32, i32) {
    %c0_i32 = arith.constant 0 : i32
    %c0_i32_0 = arith.constant 0 : i32
    %c0_i32_1 = arith.constant 0 : i32
    return %c0_i32, %c0_i32_0 : i32, i32
  }
  func.func @transform_3(%arg0: i32) -> (i32, i32) {
    %c0_i32 = arith.constant 0 : i32
    %c0_i32_0 = arith.constant 0 : i32
    return %c0_i32, %arg0 : i32, i32
  }
}

</mosaic_0001>

<bundles_post_ra>
// kernel: tpu_custom_call.1
= control target key start
LH: loop header
LB: loop body
LE: loop exit
PB: predicated region body
PF: predicated region fallthrough
CT: control target
= control target key end

     0   :  { %s1137_s0 = inlined_call_operand.hbm [shape: s32[8,768], index: 0, kind: input, shape index: {}]   ;;  %s1138_s1 = inlined_call_operand.vmem [shape: f32[1,32], index: 1, kind: input, shape index: {}]   ;;  %s1139_s2 = inlined_call_operand.<no memory space> [shape: f32[1,1], index: 2, kind: input, shape index: {}]   ;;  %s1140_s3 = inlined_call_operand.hbm [shape: f32[1,768], index: 3, kind: output, shape index: {}]  }
   0x1   :  { %v8_v0 = vstv %s1139_s2 }
   0x2   :  { %9 = vst [vmem:[#allocation2] sm:$0x1] %v8_v0 }
   0x3   :  { %10 = vsyncpa [#allocation4], 0 }
   0x4   :  { %12 = vsyncpa [#allocation4 + $0x1], 0 }
   0x5   :  { %13 = vsyncpa [#allocation5], 0 }
   0x6   :  { %15 = vsyncpa [#allocation5 + $0x1], 0  ;;  %s743_s14 = smov 0   ;;  %s745_s15 = smov 0  }
   0x7   :  { %s747_s16 = smov 0   ;;  %s749_s17 = smov 0  }
   0x8 LB: > { %s764_s2 = sadd.s32 4294967295, %s717_s17   ;;  %s557_s18 = sadd.s32 4294967294, %s717_s17   ;;  %s717_s17 = sphi %s749_s17, %s1149_s17   ;;  %s713_s16 = sphi %s747_s16, %s1148_s16   ;;  %s709_s15 = sphi %s745_s15, %s1147_s15   ;;  %s705_s14 = sphi %s743_s14, %s1146_s14  }
   0x9   : > { %s768_s19 = sadd.s32 1, %s717_s17   ;;  %s28_s20 = sadd.s32 1, %s713_s16 }
   0xa   : > { %s25_s21 = ssub.s32 %s717_s17, %s768_s19  ;;  %p35_p0 = scmp.ne.s32.totalorder %s713_s16, %s709_s15 }
   0xb   : > { %p26_p1 = scmp.eq.s32.totalorder %s25_s21, 0  ;;  %p36_p2 = scmp.eq.s32.totalorder %s717_s17, 0 }
   0xc   : > { %p41_p3 = scmp.ne.s32.totalorder %s709_s15, %s705_s14  ;;  %p42_p4 = scmp.eq.s32.totalorder %s764_s2, 0 }
   0xd   : > { %s780_s22 = scalar_select %p26_p1, %s713_s16, %s28_s20  }
   0xe   : > { %p782_p5 = por %p36_p2, %p35_p0  ;;  %p786_p6 = por %p42_p4, %p41_p3 }
   0xf   : > { %p107_p7 = scmp.eq.s32.totalorder %s764_s2, 2  ;;  %p113_p8 = scmp.eq.s32.totalorder %s557_s18, 2 }
  0x10   : > { %p585_p9 = scmp.lt.s32.totalorder %s717_s17, 3  ;;  %s139_s27 = sand.u32 1, %s713_s16  }
  0x11   : > { %p792_p10 = por %p107_p7, %p35_p0  ;;  %p796_p11 = por %p113_p8, %p41_p3 }
  0x12   : > { %s572_s28 = sshll.u32 %s717_s17, 4  ;;  %s560_s29 = sshll.u32 %s139_s27, 4 }
  0x13   : > { %s148_s5 = scalar_lea.hbm %s1137_s0, %s572_s28  ;;  %s143_s7 = scalar_lea.vmem [#allocation3], %s560_s29 }
  0x14   : > { %s150_s6 = sshll.u32 %s148_s5, 4  ;;  %s152_s8 = sshll.u32 %s143_s7, 4  ;;  %s151_s6 = int_to_ptr.hbm [resolvable:$true] %s150_s6  ;;  %s153_s8 = int_to_ptr.vmem [resolvable:$true] %s152_s8 }
  0x15   : > { %p807_p12 = pnand %p585_p9, %p782_p5  ;;  %p563_p13 = scmp.ge.s32.totalorder %s717_s17, 1 }
  0x16   : > { %p157_p0 = scmp.lt.s32.totalorder %s717_s17, 4  ;;  %s140_s10 = scalar_lea.sflag [#allocation4], %s139_s27 }
  0x17   : > { %s621_s11 = sshra.s32 %s151_s6, 4  ;;  %p625_p2 = pneg %p807_p12  ;;  %s622_s11 = int_to_ptr.hbm [resolvable:$true] %s621_s11 }
  0x18   : > { %s623_s12 = scalar_lea.hbm %s622_s11, 16  ;;  %s628_s20 = scalar_lea.hbm %s1137_s0, 48 }
  0x19   : > { %p624_p1 = scmp.ne.s32.totalorder %s622_s11, %s623_s12  ;;  %p629_p5 = scmp.lt.s32.totalorder %s622_s11, %s1137_s0 }
  0x1a   : > { %p630_p7 = scmp.lt.s32.totalorder %s628_s20, %s623_s12 }
  0x1b   : > { %p626_p3 = pnand %p625_p2, %p624_p1 }
  0x1c   : > { %p631_p8 = por %p630_p7, %p629_p5 }
  0x1d   : > { %p627_p4 = pneg %p626_p3 }
  0x1f   : > { %p632_p9 = pnand %p631_p8, %p627_p4 }
  0x21   : > { %635 = shalt.err (!%p632_p9)
}
  0x22   : > { %580 = dma.hbm_to_vmem [thread:$0]  (!%p807_p12), %s151_s6, 256, %s153_s8, %s140_s10  }
  0x23   : > { %p158_p1 = pnand %p563_p13, %p157_p0 }
  0x24   : > { %s828_s27 = sand.u32 (!%p158_p1), 1, %s709_s15  }
  0x25   : > { %161 = sbr.rel (%p158_p1) target bundleno = 242 (0xf2), region = 32  ;;  %s564_s28 = sshll.u32 (!%p158_p1), %s828_s27, 4 }
  0x26   : > { %s164_s29 = scalar_lea.sflag (!%p158_p1), [#allocation4], %s828_s27  ;;  %s167_s30 = scalar_lea.vmem (!%p158_p1), [#allocation3], %s564_s28 }
  0x2a   : > { %696 = dma.done.wait (%p786_p6), %s164_s29, 256  }
  0x2b   : > { %698 = vsyncadd (%p786_p6), %s164_s29, 4294967040  ;;  %v195_v1 = vlaneseq  ;;  %v719_v2 = vmov 0   ;;  %v193_v5 = vld [vmem:[%s167_s30] sm:$0xff]  ;;  %v194_v17 = vld [vmem:[%s167_s30 + $0x8] sm:$0xff]  ;;  %s565_s5 = sshll.u32 %s828_s27, 1  ;;  %s569_s6 = sshll.u32 %s764_s2, 1 }
  0x2c   : > { %620 = vset.pattern.permute.xlu0 %v719_v2  ;;  %v843_v6 = vperm.slane %v193_v5, 0  ;;  %v845_v7 = vperm.slane %v193_v5, 1  ;;  %v847_v8 = vperm.slane %v193_v5, 2  ;;  %v849_v9 = vperm.slane %v193_v5, 3  ;;  %s482_s9 = scalar_lea.hbm %s1140_s3, %s569_s6  ;;  %s190_s10 = scalar_lea.vmem [#allocation6], %s565_s5 }
  0x2d   : > { %v838_v3 = vshrl.u32 %v195_v1, 7  ;;  %v851_v10 = vperm.slane %v193_v5, 4  ;;  %v853_v11 = vperm.slane %v193_v5, 5  ;;  %v855_v12 = vperm.slane %v193_v5, 6  ;;  %s484_s11 = sshll.u32 %s190_s10, 4  ;;  %s486_s12 = sshll.u32 %s482_s9, 4  ;;  %s485_s11 = int_to_ptr.vmem [resolvable:$true] %s484_s11  ;;  %s487_s12 = int_to_ptr.hbm [resolvable:$true] %s486_s12 }
  0x2e   : > { %v857_v13 = vperm.slane %v193_v5, 7  ;;  %v887_v25 = vperm.slane %v194_v17, 0  ;;  %v889_v26 = vperm.slane %v194_v17, 1  ;;  %v891_v27 = vperm.slane %v194_v17, 2  ;;  %s472_s2 = scalar_lea.sflag [#allocation5], %s828_s27  ;;  %s665_s13 = sshra.s32 %s487_s12, 4  ;;  %s666_s13 = int_to_ptr.hbm [resolvable:$true] %s665_s13 }
  0x2f   : > { %v841_v4 = vadd.s32 24, %v838_v3  ;;  %v871_v18 = vadd.s32 16, %v838_v3  ;;  %v878_v20 = vadd.s32 8, %v838_v3  ;;  %v893_v28 = vperm.slane %v194_v17, 3  ;;  %s667_s18 = scalar_lea.hbm %s666_s13, 2  ;;  %s671_s23 = scalar_lea.hbm %s1140_s3, 6 }
  0x30   : > { %v895_v29 = vperm.slane %v194_v17, 4  ;;  %v897_v30 = vperm.slane %v194_v17, 5  ;;  %v903_v32 = vperm.slane %v194_v17, 6  ;;  %v921_v40 = vperm.slane %v194_v17, 7  ;;  %p668_p6 = scmp.ne.s32.totalorder %s666_s13, %s667_s18  ;;  %p672_p0 = scmp.lt.s32.totalorder %s666_s13, %s1140_s3 }
  0x31   : > { %vm208_vm0 = vcmp.eq.s32.totalorder %v841_v4, %v843_v6  ;;  %vm226_vm1 = vcmp.eq.s32.totalorder %v841_v4, %v845_v7  ;;  %vm252_vm2 = vcmp.eq.s32.totalorder %v841_v4, %v847_v8  ;;  %vm278_vm3 = vcmp.eq.s32.totalorder %v841_v4, %v849_v9  ;;  %p673_p2 = scmp.lt.s32.totalorder %s671_s23, %s667_s18 }
  0x32   : > { %v216_v14 = vsel %vm208_vm0, 1, %v719_v2  ;;  %v234_v15 = vsel %vm226_vm1, 1, %v719_v2  ;;  %v260_v16 = vsel %vm252_vm2, 1, %v719_v2  ;;  %vm304_vm4 = vcmp.eq.s32.totalorder %v841_v4, %v851_v10  ;;  %p669_p12 = pnand %p668_p6, %p792_p10 }
  0x33   : > { %v242_v19 = vadd.s32 %v234_v15, %v216_v14  ;;  %vm330_vm5 = vcmp.eq.s32.totalorder %v841_v4, %v853_v11  ;;  %v286_v21 = vsel %vm278_vm3, 1, %v719_v2  ;;  %v312_v22 = vsel %vm304_vm4, 1, %v719_v2  ;;  %p674_p3 = por %p673_p2, %p672_p0 }
  0x34   : > { %v338_v23 = vsel %vm330_vm5, 1, %v719_v2  ;;  %vm356_vm6 = vcmp.eq.s32.totalorder %v841_v4, %v855_v12  ;;  %vm382_vm7 = vcmp.eq.s32.totalorder %v841_v4, %v857_v13  ;;  %vm209_vm8 = vcmp.eq.s32.totalorder %v841_v4, %v887_v25  ;;  %p670_p13 = pneg %p669_p12 }
  0x35   : > { %v268_v24 = vadd.s32 %v260_v16, %v242_v19  ;;  %vm227_vm9 = vcmp.eq.s32.totalorder %v841_v4, %v889_v26  ;;  %v217_v33 = vsel %vm209_vm8, 1, %v719_v2  ;;  %vm253_vm10 = vcmp.eq.s32.totalorder %v841_v4, %v891_v27 }
  0x36   : > { %v235_v34 = vsel %vm227_vm9, 1, %v719_v2  ;;  %vm279_vm11 = vcmp.eq.s32.totalorder %v841_v4, %v893_v28  ;;  %v364_v36 = vsel %vm356_vm6, 1, %v719_v2  ;;  %v261_v38 = vsel %vm253_vm10, 1, %v719_v2  ;;  %p675_p4 = pnand %p674_p3, %p670_p13 }
  0x37   : > { %v294_v31 = vadd.s32 %v286_v21, %v268_v24  ;;  %v243_v37 = vadd.s32 %v235_v34, %v217_v33  ;;  %v287_v39 = vsel %vm279_vm11, 1, %v719_v2  ;;  %vm305_vm12 = vcmp.eq.s32.totalorder %v841_v4, %v895_v29 }
  0x38   : > { %vm331_vm13 = vcmp.eq.s32.totalorder %v841_v4, %v897_v30  ;;  %v390_v42 = vsel %vm382_vm7, 1, %v719_v2  ;;  %vm357_vm14 = vcmp.eq.s32.totalorder %v841_v4, %v903_v32  ;;  %v313_v44 = vsel %vm305_vm12, 1, %v719_v2 }
  0x39   : > { %v320_v35 = vadd.s32 %v312_v22, %v294_v31  ;;  %v269_v43 = vadd.s32 %v261_v38, %v243_v37  ;;  %v339_v45 = vsel %vm331_vm13, 1, %v719_v2  ;;  %vm206_vm15 = vcmp.eq.s32.totalorder %v871_v18, %v843_v6 }
  0x3a   : > { %vm224_vm0 = vcmp.eq.s32.totalorder %v871_v18, %v845_v7  ;;  %vm383_vm1 = vcmp.eq.s32.totalorder %v841_v4, %v921_v40  ;;  %v214_v48 = vsel %vm206_vm15, 1, %v719_v2  ;;  %vm250_vm2 = vcmp.eq.s32.totalorder %v871_v18, %v847_v8 }
  0x3b   : > { %v346_v41 = vadd.s32 %v338_v23, %v320_v35  ;;  %v295_v47 = vadd.s32 %v287_v39, %v269_v43  ;;  %v232_v49 = vsel %vm224_vm0, 1, %v719_v2  ;;  %vm276_vm3 = vcmp.eq.s32.totalorder %v871_v18, %v849_v9 }
  0x3c   : > { %vm302_vm4 = vcmp.eq.s32.totalorder %v871_v18, %v851_v10  ;;  %v240_v52 = vadd.s32 %v232_v49, %v214_v48  ;;  %v258_v53 = vsel %vm250_vm2, 1, %v719_v2  ;;  %v365_v54 = vsel %vm357_vm14, 1, %v719_v2 }
  0x3d   : > { %v372_v46 = vadd.s32 %v364_v36, %v346_v41  ;;  %v321_v51 = vadd.s32 %v313_v44, %v295_v47  ;;  %v391_v55 = vsel %vm383_vm1, 1, %v719_v2  ;;  %v284_v56 = vsel %vm276_vm3, 1, %v719_v2 }
  0x3e   : > { %vm328_vm5 = vcmp.eq.s32.totalorder %v871_v18, %v853_v11  ;;  %v266_v59 = vadd.s32 %v258_v53, %v240_v52  ;;  %v310_v60 = vsel %vm302_vm4, 1, %v719_v2  ;;  %vm354_vm6 = vcmp.eq.s32.totalorder %v871_v18, %v855_v12 }
  0x3f   : > { %v398_v50 = vadd.s32 %v390_v42, %v372_v46  ;;  %v347_v58 = vadd.s32 %v339_v45, %v321_v51  ;;  %v336_v61 = vsel %vm328_vm5, 1, %v719_v2  ;;  %vm207_vm7 = vcmp.eq.s32.totalorder %v871_v18, %v887_v25 }
  0x40   : > { %vm225_vm8 = vcmp.eq.s32.totalorder %v871_v18, %v889_v26  ;;  %v292_v63 = vadd.s32 %v284_v56, %v266_v59  ;;  %vm380_vm9 = vcmp.eq.s32.totalorder %v871_v18, %v857_v13  ;;  %v215_v0 = vsel %vm207_vm7, 1, %v719_v2 }
  0x41   : > { %v406_v57 = vcvt.s32.f32 %v398_v50  ;;  %v373_v62 = vadd.s32 %v365_v54, %v347_v58  ;;  %v233_v4 = vsel %vm225_vm8, 1, %v719_v2  ;;  %vm251_vm10 = vcmp.eq.s32.totalorder %v871_v18, %v891_v27 }
  0x42   : > { %vm277_vm11 = vcmp.eq.s32.totalorder %v871_v18, %v893_v28  ;;  %vm303_vm12 = vcmp.eq.s32.totalorder %v871_v18, %v895_v29  ;;  %v318_v14 = vadd.s32 %v310_v60, %v292_v63  ;;  %v241_v15 = vadd.s32 %v233_v4, %v215_v0 }
  0x43   : > { %432 = vmatpush.msra.mxu0 %v406_v57  ;;  %v399_v5 = vadd.s32 %v391_v55, %v373_v62  ;;  %v259_v16 = vsel %vm251_vm10, 1, %v719_v2  ;;  %v362_v17 = vsel %vm354_vm6, 1, %v719_v2  ;;  %v388_v19 = vsel %vm380_vm9, 1, %v719_v2 }
  0x44   : > { %v285_v21 = vsel %vm277_vm11, 1, %v719_v2  ;;  %vm329_vm13 = vcmp.eq.s32.totalorder %v871_v18, %v897_v30  ;;  %v344_v23 = vadd.s32 %v336_v61, %v318_v14  ;;  %v267_v24 = vadd.s32 %v259_v16, %v241_v15 }
  0x45   : > { %v407_v22 = vcvt.s32.f32 %v399_v5  ;;  %v311_v31 = vsel %vm303_vm12, 1, %v719_v2  ;;  %v337_v33 = vsel %vm329_vm13, 1, %v719_v2  ;;  %vm355_vm14 = vcmp.eq.s32.totalorder %v871_v18, %v903_v32 }
  0x46   : > { %vm204_vm15 = vcmp.eq.s32.totalorder %v878_v20, %v843_v6  ;;  %vm222_vm0 = vcmp.eq.s32.totalorder %v878_v20, %v845_v7  ;;  %v370_v34 = vadd.s32 %v362_v17, %v344_v23  ;;  %v293_v35 = vadd.s32 %v285_v21, %v267_v24 }
  0x47   : > { %452 = vmatpush.msra.mxu1 %v407_v22  ;;  %vm381_vm1 = vcmp.eq.s32.totalorder %v871_v18, %v921_v40  ;;  %v212_v36 = vsel %vm204_vm15, 1, %v719_v2  ;;  %v230_v37 = vsel %vm222_vm0, 1, %v719_v2  ;;  %vm248_vm2 = vcmp.eq.s32.totalorder %v878_v20, %v847_v8  ;;  %v409_v18 = vld [vmem:[#allocation2] sm:$0x1] }
  0x48   : > { %vm274_vm3 = vcmp.eq.s32.totalorder %v878_v20, %v849_v9  ;;  %vm300_vm4 = vcmp.eq.s32.totalorder %v878_v20, %v851_v10  ;;  %v396_v38 = vadd.s32 %v388_v19, %v370_v34  ;;  %v319_v39 = vadd.s32 %v311_v31, %v293_v35  ;;  %412 = vperm.xlu0 %620, %v409_v18  }
  0x49   : > { %v238_v41 = vadd.s32 %v230_v37, %v212_v36  ;;  %v256_v42 = vsel %vm248_vm2, 1, %v719_v2  ;;  %v363_v43 = vsel %vm355_vm14, 1, %v719_v2  ;;  %v389_v44 = vsel %vm381_vm1, 1, %v719_v2 }
  0x4a   : > { %v282_v45 = vsel %vm274_vm3, 1, %v719_v2  ;;  %vm326_vm5 = vcmp.eq.s32.totalorder %v878_v20, %v853_v11  ;;  %v404_v46 = vcvt.s32.f32 %v396_v38  ;;  %v345_v47 = vadd.s32 %v337_v33, %v319_v39 }
  0x4b   : > { %v264_v48 = vadd.s32 %v256_v42, %v238_v41  ;;  %v308_v49 = vsel %vm300_vm4, 1, %v719_v2  ;;  %v334_v50 = vsel %vm326_vm5, 1, %v719_v2  ;;  %vm352_vm6 = vcmp.eq.s32.totalorder %v878_v20, %v855_v12 }
  0x4c   : > { %vm205_vm7 = vcmp.eq.s32.totalorder %v878_v20, %v887_v25  ;;  %vm223_vm8 = vcmp.eq.s32.totalorder %v878_v20, %v889_v26  ;;  %433 = vmatpush.msra.mxu0 %v404_v46  ;;  %v371_v51 = vadd.s32 %v363_v43, %v345_v47  ;;  %vm378_vm9 = vcmp.eq.s32.totalorder %v878_v20, %v857_v13 }
  0x4d   : > { %v290_v52 = vadd.s32 %v282_v45, %v264_v48  ;;  %v213_v53 = vsel %vm205_vm7, 1, %v719_v2  ;;  %v231_v54 = vsel %vm223_vm8, 1, %v719_v2  ;;  %vm249_vm10 = vcmp.eq.s32.totalorder %v878_v20, %v891_v27  ;;  %v408_v48 = vld [vmem:[%s1138_s1] sm:$0x1] }
  0x4e   : > { %vm275_vm11 = vcmp.eq.s32.totalorder %v878_v20, %v893_v28  ;;  %vm301_vm12 = vcmp.eq.s32.totalorder %v878_v20, %v895_v29  ;;  %v397_v55 = vadd.s32 %v389_v44, %v371_v51  ;;  %v239_v57 = vadd.s32 %v231_v54, %v213_v53 }
  0x4f   : > { %v316_v56 = vadd.s32 %v308_v49, %v290_v52  ;;  %v257_v58 = vsel %vm249_vm10, 1, %v719_v2  ;;  %v360_v59 = vsel %vm352_vm6, 1, %v719_v2  ;;  %v386_v60 = vsel %vm378_vm9, 1, %v719_v2 }
  0x50   : > { %v283_v61 = vsel %vm275_vm11, 1, %v719_v2  ;;  %vm327_vm13 = vcmp.eq.s32.totalorder %v878_v20, %v897_v30  ;;  %v405_v62 = vcvt.s32.f32 %v397_v55  ;;  %v265_v0 = vadd.s32 %v257_v58, %v239_v57 }
  0x51   : > { %v342_v63 = vadd.s32 %v334_v50, %v316_v56  ;;  %v309_v4 = vsel %vm301_vm12, 1, %v719_v2  ;;  %v335_v5 = vsel %vm327_vm13, 1, %v719_v2  ;;  %vm353_vm14 = vcmp.eq.s32.totalorder %v878_v20, %v903_v32 }
  0x52   : > { %vm202_vm15 = vcmp.eq.s32.totalorder %v838_v3, %v843_v6  ;;  %vm220_vm0 = vcmp.eq.s32.totalorder %v838_v3, %v845_v7  ;;  %453 = vmatpush.msra.mxu1 %v405_v62  ;;  %v291_v15 = vadd.s32 %v283_v61, %v265_v0  ;;  %vm379_vm1 = vcmp.eq.s32.totalorder %v878_v20, %v921_v40 }
  0x53   : > { %v368_v14 = vadd.s32 %v360_v59, %v342_v63  ;;  %v210_v16 = vsel %vm202_vm15, 1, %v719_v2  ;;  %v228_v17 = vsel %vm220_vm0, 1, %v719_v2  ;;  %vm246_vm2 = vcmp.eq.s32.totalorder %v838_v3, %v847_v8 }
  0x54   : > { %vm272_vm3 = vcmp.eq.s32.totalorder %v838_v3, %v849_v9  ;;  %vm298_vm4 = vcmp.eq.s32.totalorder %v838_v3, %v851_v10  ;;  %v317_v7 = vadd.s32 %v309_v4, %v291_v15  ;;  %v236_v19 = vadd.s32 %v228_v17, %v210_v16 }
  0x55   : > { %v394_v6 = vadd.s32 %v386_v60, %v368_v14  ;;  %v254_v21 = vsel %vm246_vm2, 1, %v719_v2  ;;  %v361_v22 = vsel %vm353_vm14, 1, %v719_v2  ;;  %v387_v23 = vsel %vm379_vm1, 1, %v719_v2 }
  0x56   : > { %v280_v8 = vsel %vm272_vm3, 1, %v719_v2  ;;  %vm324_vm5 = vcmp.eq.s32.totalorder %v838_v3, %v853_v11  ;;  %v343_v24 = vadd.s32 %v335_v5, %v317_v7  ;;  %v262_v10 = vadd.s32 %v254_v21, %v236_v19 }
  0x57   : > { %v402_v9 = vcvt.s32.f32 %v394_v6  ;;  %v306_v31 = vsel %vm298_vm4, 1, %v719_v2  ;;  %v332_v33 = vsel %vm324_vm5, 1, %v719_v2  ;;  %vm350_vm6 = vcmp.eq.s32.totalorder %v838_v3, %v855_v12 }
  0x58   : > { %vm203_vm7 = vcmp.eq.s32.totalorder %v838_v3, %v887_v25  ;;  %vm221_vm8 = vcmp.eq.s32.totalorder %v838_v3, %v889_v26  ;;  %v369_v20 = vadd.s32 %v361_v22, %v343_v24  ;;  %v288_v34 = vadd.s32 %v280_v8, %v262_v10 }
  0x59   : > { %434 = vmatpush.msra.mxu0 %v402_v9  ;;  %vm376_vm9 = vcmp.eq.s32.totalorder %v838_v3, %v857_v13  ;;  %v211_v11 = vsel %vm203_vm7, 1, %v719_v2  ;;  %v229_v35 = vsel %vm221_vm8, 1, %v719_v2  ;;  %vm247_vm10 = vcmp.eq.s32.totalorder %v838_v3, %v891_v27 }
  0x5a   : > { %vm273_vm11 = vcmp.eq.s32.totalorder %v838_v3, %v893_v28  ;;  %vm299_vm12 = vcmp.eq.s32.totalorder %v838_v3, %v895_v29  ;;  %v395_v25 = vadd.s32 %v387_v23, %v369_v20  ;;  %v314_v26 = vadd.s32 %v306_v31, %v288_v34 }
  0x5b   : > { %v237_v36 = vadd.s32 %v229_v35, %v211_v11  ;;  %v255_v37 = vsel %vm247_vm10, 1, %v719_v2  ;;  %v358_v38 = vsel %vm350_vm6, 1, %v719_v2  ;;  %v281_v39 = vsel %vm273_vm11, 1, %v719_v2 }
  0x5c   : > { %v403_v41 = vcvt.s32.f32 %v395_v25  ;;  %v340_v27 = vadd.s32 %v332_v33, %v314_v26  ;;  %vm325_vm13 = vcmp.eq.s32.totalorder %v838_v3, %v897_v30  ;;  %v384_v28 = vsel %vm376_vm9, 1, %v719_v2 }
  0x5d   : > { %v263_v42 = vadd.s32 %v255_v37, %v237_v36  ;;  %v307_v29 = vsel %vm299_vm12, 1, %v719_v2  ;;  %vm351_vm14 = vcmp.eq.s32.totalorder %v838_v3, %v903_v32  ;;  %v333_v12 = vsel %vm325_vm13, 1, %v719_v2 }
  0x5e   : > { %454 = vmatpush.msra.mxu1 %v403_v41  ;;  %v366_v43 = vadd.s32 %v358_v38, %v340_v27  ;;  %vm377_vm15 = vcmp.eq.s32.totalorder %v838_v3, %v921_v40  ;;  %v359_v13 = vsel %vm351_vm14, 1, %v719_v2  ;;  %vm416_vm0 = vcmask 261120  }
  0x5f   : > { %v289_v44 = vadd.s32 %v281_v39, %v263_v42  ;;  %v385_v32 = vsel %vm377_vm15, 1, %v719_v2  ;;  %vm463_vm1 = vcmask 1040384   ;;  %vm468_vm2 = vcmp.lt.s32.totalorder %v195_v1, 256 }
  0x60   : > { %v392_v45 = vadd.s32 %v384_v28, %v366_v43 }
  0x61   : > { %v315_v46 = vadd.s32 %v307_v29, %v289_v44 }
  0x62   : > { %v400_v30 = vcvt.s32.f32 %v392_v45 }
  0x63   : > { %v341_v47 = vadd.s32 %v333_v12, %v315_v46 }
  0x64   : > { %435 = vmatpush.msra.mxu0 %v400_v30 }
  0x65   : > { %v367_v49 = vadd.s32 %v359_v13, %v341_v47  ;;  %566 = vmatmul.msk.f32.vlgmr.msra.gmra.mxu0 %vm416_vm0, %v408_v48 }
  0x67   : > { %v393_v50 = vadd.s32 %v385_v32, %v367_v49 }
  0x69   : > { %v401_v18 = vcvt.s32.f32 %v393_v50 }
  0x6b   : > { %455 = vmatpush.msra.mxu1 %v401_v18 }
  0x6c   : > { %567 = vmatmul.msk.f32.vlgmr.msra.gmra.mxu1 %vm416_vm0, %v408_v48 }
  0xba   : > { %v413_v3 = vpop.permute.xlu0 %412 }
  0xbb   : > { %v415_v40 = vperm.slane %v413_v3, 0 }
  0xe2   : > { %v437_v51 = vpop.f32.mrf.mxu0 }
  0xe3   : > { %v438_v2 = vadd.f32 %v437_v51, %v415_v40 }
  0xe9   : > { %v457_v52 = vpop.f32.mrf.mxu1 }
  0xea   : > { %v458_v53 = vadd.f32 %v457_v52, %v415_v40 }
  0xec   : > { %v462_v54 = vrot.slane %v458_v53, 7 }
  0xee   : > { %v464_v55 = vsel %vm463_vm1, %v438_v2, %v462_v54 }
  0xef   : > { %470 = vst.msk [vmem:[%s190_s10] sm:$0x3] %vm468_vm2, %v464_v55 }
  0xf0   : > { %678 = shalt.err (!%p675_p4)
}
  0xf1   : > { %575 = dma.vmem_to_hbm [thread:$0]  (%p792_p10), %s485_s11, 32, %s487_s12, %s472_s2  }
  0xf2 PF: > { %p586_p5 = scmp.ge.s32.totalorder %s717_s17, 2  ;;  %s498_s27 = sand.u32 1, %s705_s14  }
  0xf3   : > { %s499_s30 = scalar_lea.sflag [#allocation5], %s498_s27 }
  0xf4   : > { %p582_p7 = pnand %p586_p5, %p796_p11 }
  0xf6   : > { %p583_p8 = pneg %p582_p7 }
  0xf8   : > { %700 = dma.done.wait (%p583_p8), %s499_s30, 32  }
  0xf9   : > { %702 = vsyncadd (%p583_p8), %s499_s30, 4294967264  ;;  %p18_p9 = scmp.ge.s32.totalorder %s768_s19, 5   ;;  %s1146_s14 = smov %s709_s15 }
  0xfa   : > { %s1147_s15 = smov %s713_s16  ;;  %s1148_s16 = smov %s780_s22 }
  0xfb   : > { %s1149_s17 = smov %s768_s19  ;;  %20 = sbr.rel (!%p18_p9) target bundleno = 8 (0x8), region = 77 }
 0x100   :  { %505 = vsyncpa [#allocation4], 1 }
 0x101   :  { %507 = vsyncpa [#allocation4 + $0x1], 1 }
 0x102   :  { %508 = vsyncpa [#allocation5], 1 }
 0x103   :  { %510 = vsyncpa [#allocation5 + $0x1], 1 }

</bundles_post_ra>
